<compile_context>
chip_gen: v7x
topology: tpu7x:2x2x1
jax: 0.10.0
libtpu: 0.0.40
codegen_flags: <defaults>
</compile_context>

<pallas_src>
import jax
import jax.numpy as jnp
from jax.experimental import pallas as pl
from jax.experimental.pallas import tpu as pltpu


def _round_up(x, m):
    return (x + m - 1) // m * m


def embedding_net_kernel(users_sref, movies_sref,                 # scalar-prefetch (SMEM)
                         u_tab_ref, m_tab_ref, w1u_ref, w1m_ref,  # VMEM params
                         b1_ref, wfc_ref, scal_ref,               # VMEM / SMEM
                         out_ref,                                 # output block
                         u_scr, m_scr):                           # VMEM scratch
    tile_b = out_ref.shape[0]
    base = pl.program_id(0) * tile_b

    # ---- embedding gather: one row copy per batch element (indices from SMEM) ----
    def gather_row(r, carry):
        u_idx = users_sref[base + r]
        m_idx = movies_sref[base + r]
        u_scr[pl.ds(r, 1), :] = u_tab_ref[pl.ds(u_idx, 1), :]
        m_scr[pl.ds(r, 1), :] = m_tab_ref[pl.ds(m_idx, 1), :]
        return carry

    jax.lax.fori_loop(0, tile_b, gather_row, 0)

    # ---- hidden layer: cat([u, m]) @ W1 == u @ W1u + m @ W1m  (no concat relayout) ----
    h = jnp.dot(u_scr[...], w1u_ref[...], preferred_element_type=jnp.float32)
    h = h + jnp.dot(m_scr[...], w1m_ref[...], preferred_element_type=jnp.float32)
    h = h + b1_ref[...].astype(jnp.float32)
    h = jnp.maximum(h, 0.0)                                   # ReLU

    # ---- fc (out_features=1): VPU multiply + lane reduction instead of N=1 matmul ----
    wfc = wfc_ref[...].astype(jnp.float32)                    # (1, hidden)
    logit = jnp.sum(h * wfc, axis=-1, keepdims=True) + scal_ref[0]   # + fc bias

    # ---- sigmoid + minmax rescale (scale=1, offset=0 when minmax is None) ----
    out_ref[...] = jax.nn.sigmoid(logit) * scal_ref[1] + scal_ref[2]


def embedding_net_forward(users, movies, params, minmax=None, *, tile_b=256):
    u_tab, m_tab, w1, b1, wfc, bfc = params
    n_users, n_factors = u_tab.shape
    n_movies, _ = m_tab.shape
    hidden = w1.shape[1]
    B = users.shape[0]

    # Batch tiling: 256 rows fills the MXU M dimension; shrink for tiny batches.
    tile_b = int(min(tile_b, _round_up(max(B, 8), 8)))
    b_pad = _round_up(B, tile_b)
    num_tiles = b_pad // tile_b

    # Clamp indices (PyTorch nn.Embedding would raise on OOB; we clamp explicitly)
    # and pad the batch with index 0 rows (sliced off after the call).
    users_idx = jnp.clip(users.astype(jnp.int32), 0, n_users - 1)
    movies_idx = jnp.clip(movies.astype(jnp.int32), 0, n_movies - 1)
    users_idx = jnp.pad(users_idx, (0, b_pad - B))
    movies_idx = jnp.pad(movies_idx, (0, b_pad - B))

    # Split the first Linear so the concat is never materialized.
    w1_u = w1[:n_factors]
    w1_m = w1[n_factors:]
    b1_row = b1.reshape(1, hidden)
    wfc_row = wfc.reshape(1, hidden)

    if minmax is None:
        scale, offset = 1.0, 0.0
    else:
        mn, mx = minmax
        scale, offset = float(mx) - float(mn) + 1.0, float(mn) - 0.5
    # [fc bias, scale, offset] -> SMEM scalars.
    scalars = jnp.concatenate([bfc.reshape(1).astype(jnp.float32),
                               jnp.asarray([scale, offset], dtype=jnp.float32)])

    tab_dtype = u_tab.dtype
    itemsize = jnp.dtype(tab_dtype).itemsize

    # Explicit VMEM budget (v5e's default scoped limit is only 16 MiB).
    param_bytes = sum(int(x.size) * jnp.dtype(x.dtype).itemsize
                      for x in (u_tab, m_tab, w1_u, w1_m, b1_row, wfc_row))
    tile_bytes = tile_b * (2 * n_factors * itemsize + 4)      # scratch + out block
    vmem_limit = int(min(64 * 2**20,
                         max(32 * 2**20, 2 * (param_bytes + 2 * tile_bytes) + (1 << 20))))

    grid_spec = pltpu.PrefetchScalarGridSpec(
        num_scalar_prefetch=2,                                # users_idx, movies_idx -> SMEM
        grid=(num_tiles,),
        in_specs=[
            pl.BlockSpec((n_users, n_factors), lambda i, *_: (0, 0)),   # u table (VMEM resident)
            pl.BlockSpec((n_movies, n_factors), lambda i, *_: (0, 0)),  # m table (VMEM resident)
            pl.BlockSpec((n_factors, hidden), lambda i, *_: (0, 0)),    # w1_u
            pl.BlockSpec((n_factors, hidden), lambda i, *_: (0, 0)),    # w1_m
            pl.BlockSpec((1, hidden), lambda i, *_: (0, 0)),            # b1
            pl.BlockSpec((1, hidden), lambda i, *_: (0, 0)),            # wfc row
            pl.BlockSpec(memory_space=pltpu.MemorySpace.SMEM),          # [bfc, scale, offset]
        ],
        out_specs=pl.BlockSpec((tile_b, 1), lambda i, *_: (i, 0)),
        scratch_shapes=[pltpu.VMEM((tile_b, n_factors), tab_dtype),
                        pltpu.VMEM((tile_b, n_factors), tab_dtype)],
    )

    out = pl.pallas_call(
        embedding_net_kernel,
        out_shape=jax.ShapeDtypeStruct((b_pad, 1), jnp.float32),
        grid_spec=grid_spec,
        compiler_params=pltpu.CompilerParams(
            dimension_semantics=("parallel",),
            vmem_limit_bytes=vmem_limit),
    )(users_idx, movies_idx, u_tab, m_tab, w1_u, w1_m, b1_row, wfc_row, scalars)

    return out[:B]


def init_params(key, n_users, n_movies, n_factors, hidden):
    """Deterministic init mirroring EmbeddingNet._init (uniform embeds, xavier linears, bias=0.01)."""
    k1, k2, k3, k4 = jax.random.split(key, 4)
    u_tab = jax.random.uniform(k1, (n_users, n_factors), jnp.float32, -0.05, 0.05)
    m_tab = jax.random.uniform(k2, (n_movies, n_factors), jnp.float32, -0.05, 0.05)

    fan_in = 2 * n_factors
    lim1 = (6.0 / (fan_in + hidden)) ** 0.5
    w1 = jax.random.uniform(k3, (fan_in, hidden), jnp.float32, -lim1, lim1)  # stored (in, out)
    b1 = jnp.full((1, hidden), 0.01, jnp.float32)

    lim2 = (6.0 / (hidden + 1)) ** 0.5
    wfc = jax.random.uniform(k4, (hidden, 1), jnp.float32, -lim2, lim2)      # stored (in, out)
    bfc = jnp.full((1, 1), 0.01, jnp.float32)
    return u_tab, m_tab, w1, b1, wfc, bfc


def reference_forward(users, movies, params, minmax=None):
    """Pure-JAX reference of EmbeddingNet.forward (eval mode)."""
    u_tab, m_tab, w1, b1, wfc, bfc = params
    feats = jnp.concatenate([u_tab[users], m_tab[movies]], axis=1)
    h = jnp.maximum(feats @ w1 + b1, 0.0)
    out = jax.nn.sigmoid(h @ wfc + bfc)
    if minmax is None:
        return out
    mn, mx = minmax
    return out * (mx - mn + 1.0) + mn - 0.5


if __name__ == "__main__":
    B = 8
    n_users, n_movies = 32, 48
    n_factors, hidden = 16, 32
    minmax = (1.0, 5.0)

    key = jax.random.PRNGKey(0)
    kp, ku, km = jax.random.split(key, 3)
    params = init_params(kp, n_users, n_movies, n_factors, hidden)
    users = jax.random.randint(ku, (B,), 0, n_users, dtype=jnp.int32)
    movies = jax.random.randint(km, (B,), 0, n_movies, dtype=jnp.int32)

    out = embedding_net_forward(users, movies, params, minmax)
    out = jax.block_until_ready(out)

    ref = reference_forward(users, movies, params, minmax)
    assert out.shape == (B, 1), out.shape
    assert jnp.allclose(out, ref, atol=1e-5, rtol=1e-5), (out, ref)

    print("KERNEL_OK")
</pallas_src>

<mosaic_0001>
module attributes {stable_mosaic.version = 11 : i64} {
  func.func @embedding_net_kernel(%arg0: i32, %arg1: memref<8xi32, #tpu.memory_space<smem>>, %arg2: memref<8xi32, #tpu.memory_space<smem>>, %arg3: memref<32x16xf32, #tpu.memory_space<vmem>>, %arg4: memref<48x16xf32, #tpu.memory_space<vmem>>, %arg5: memref<16x32xf32, #tpu.memory_space<vmem>>, %arg6: memref<16x32xf32, #tpu.memory_space<vmem>>, %arg7: memref<1x32xf32, #tpu.memory_space<vmem>>, %arg8: memref<1x32xf32, #tpu.memory_space<vmem>>, %arg9: memref<3xf32, #tpu.memory_space<smem>>, %arg10: memref<8x1xf32, #tpu.memory_space<vmem>>, %arg11: memref<8x16xf32, #tpu.memory_space<vmem>>, %arg12: memref<8x16xf32, #tpu.memory_space<vmem>>) attributes {dimension_semantics = [#tpu.dimension_semantics<parallel>], iteration_bounds = array<i64: 1>, scalar_prefetch = 2 : i64, scratch_operands = 2 : i64, tpu.core_type = #tpu.core_type<tc>, window_params = [{pipeline_mode = #tpu.pipeline_mode<synchronous>, transform_indices = @transform_0, window_bounds = array<i64: 32, 16>}, {pipeline_mode = #tpu.pipeline_mode<synchronous>, transform_indices = @transform_1, window_bounds = array<i64: 48, 16>}, {pipeline_mode = #tpu.pipeline_mode<synchronous>, transform_indices = @transform_2, window_bounds = array<i64: 16, 32>}, {pipeline_mode = #tpu.pipeline_mode<synchronous>, transform_indices = @transform_3, window_bounds = array<i64: 16, 32>}, {pipeline_mode = #tpu.pipeline_mode<synchronous>, transform_indices = @transform_4, window_bounds = array<i64: 1, 32>}, {pipeline_mode = #tpu.pipeline_mode<synchronous>, transform_indices = @transform_5, window_bounds = array<i64: 1, 32>}, {transform_indices = @transform_6, window_bounds = array<i64: 3>}, {transform_indices = @transform_7, window_bounds = array<i64: 8, 1>}]} {
    %c8_i32 = arith.constant 8 : i32
    %0 = arith.muli %arg0, %c8_i32 : i32
    %c0_i32 = arith.constant 0 : i32
    %c8_i32_0 = arith.constant 8 : i32
    %1 = arith.addi %c0_i32, %c8_i32_0 : i32
    %c1_i32 = arith.constant 1 : i32
    scf.for %arg13 = %c0_i32 to %1 step %c1_i32  : i32 {
      %34 = arith.addi %0, %arg13 : i32
      %35 = arith.index_cast %34 : i32 to index
      %36 = memref.load %arg1[%35] : memref<8xi32, #tpu.memory_space<smem>>
      %37 = arith.addi %0, %arg13 : i32
      %38 = arith.index_cast %37 : i32 to index
      %39 = memref.load %arg2[%38] : memref<8xi32, #tpu.memory_space<smem>>
      %40 = arith.index_cast %36 : i32 to index
      %c0_20 = arith.constant 0 : index
      %41 = vector.load %arg3[%40, %c0_20] : memref<32x16xf32, #tpu.memory_space<vmem>>, vector<1x16xf32>
      %42 = arith.index_cast %arg13 : i32 to index
      %c0_21 = arith.constant 0 : index
      %43 = vector.load %arg11[%42, %c0_21] : memref<8x16xf32, #tpu.memory_space<vmem>>, vector<1x16xf32>
      tpu.vector_store %arg11[%42, %c0_21], %41 {strides = array<i32>} : memref<8x16xf32, #tpu.memory_space<vmem>>, vector<1x16xf32>,
      %44 = arith.index_cast %39 : i32 to index
      %c0_22 = arith.constant 0 : index
      %45 = vector.load %arg4[%44, %c0_22] : memref<48x16xf32, #tpu.memory_space<vmem>>, vector<1x16xf32>
      %46 = arith.index_cast %arg13 : i32 to index
      %c0_23 = arith.constant 0 : index
      %47 = vector.load %arg12[%46, %c0_23] : memref<8x16xf32, #tpu.memory_space<vmem>>, vector<1x16xf32>
      tpu.vector_store %arg12[%46, %c0_23], %45 {strides = array<i32>} : memref<8x16xf32, #tpu.memory_space<vmem>>, vector<1x16xf32>,
    }
    %c8_i32_1 = arith.constant 8 : i32
    %c0 = arith.constant 0 : index
    %c0_2 = arith.constant 0 : index
    %2 = vector.load %arg11[%c0, %c0_2] : memref<8x16xf32, #tpu.memory_space<vmem>>, vector<8x16xf32>
    %c0_3 = arith.constant 0 : index
    %c0_4 = arith.constant 0 : index
    %3 = vector.load %arg5[%c0_3, %c0_4] : memref<16x32xf32, #tpu.memory_space<vmem>>, vector<16x32xf32>
    %cst = arith.constant dense<0.000000e+00> : vector<8x32xf32>
    %4 = tpu.matmul %2, %3, %cst {dimension_numbers = #tpu.dot_dimension_numbers<[1], [0], [0], [1], [0, 0, 1, 1], [], []>} : vector<8x16xf32>, vector<16x32xf32>, vector<8x32xf32> -> vector<8x32xf32>
    %c0_5 = arith.constant 0 : index
    %c0_6 = arith.constant 0 : index
    %5 = vector.load %arg12[%c0_5, %c0_6] : memref<8x16xf32, #tpu.memory_space<vmem>>, vector<8x16xf32>
    %c0_7 = arith.constant 0 : index
    %c0_8 = arith.constant 0 : index
    %6 = vector.load %arg6[%c0_7, %c0_8] : memref<16x32xf32, #tpu.memory_space<vmem>>, vector<16x32xf32>
    %cst_9 = arith.constant dense<0.000000e+00> : vector<8x32xf32>
    %7 = tpu.matmul %5, %6, %cst_9 {dimension_numbers = #tpu.dot_dimension_numbers<[1], [0], [0], [1], [0, 0, 1, 1], [], []>} : vector<8x16xf32>, vector<16x32xf32>, vector<8x32xf32> -> vector<8x32xf32>
    %8 = arith.addf %4, %7 : vector<8x32xf32>
    %c0_10 = arith.constant 0 : index
    %c0_11 = arith.constant 0 : index
    %9 = vector.load %arg7[%c0_10, %c0_11] : memref<1x32xf32, #tpu.memory_space<vmem>>, vector<1x32xf32>
    %10 = vector.broadcast %9 : vector<1x32xf32> to vector<8x32xf32>
    %11 = arith.addf %8, %10 : vector<8x32xf32>
    %cst_12 = arith.constant 0.000000e+00 : f32
    %12 = vector.broadcast %cst_12 : f32 to vector<8x32xf32>
    %13 = arith.maximumf %11, %12 : vector<8x32xf32>
    %c0_13 = arith.constant 0 : index
    %c0_14 = arith.constant 0 : index
    %14 = vector.load %arg8[%c0_13, %c0_14] : memref<1x32xf32, #tpu.memory_space<vmem>>, vector<1x32xf32>
    %15 = vector.broadcast %14 : vector<1x32xf32> to vector<8x32xf32>
    %16 = arith.mulf %13, %15 : vector<8x32xf32>
    %cst_15 = arith.constant dense<0.000000e+00> : vector<8xf32>
    %17 = vector.multi_reduction <add>, %16, %cst_15 [1] : vector<8x32xf32> to vector<8xf32>
    %18 = vector.shape_cast %17 : vector<8xf32> to vector<8x1xf32>
    %c0_16 = arith.constant 0 : index
    %19 = memref.load %arg9[%c0_16] : memref<3xf32, #tpu.memory_space<smem>>
    %20 = vector.broadcast %19 : f32 to vector<8x1xf32>
    %21 = arith.addf %18, %20 : vector<8x1xf32>
    %22 = arith.negf %21 : vector<8x1xf32>
    %23 = math.exp %22 : vector<8x1xf32>
    %cst_17 = arith.constant 1.000000e+00 : f32
    %24 = vector.broadcast %cst_17 : f32 to vector<8x1xf32>
    %25 = arith.addf %24, %23 : vector<8x1xf32>
    %26 = arith.divf %24, %25 : vector<8x1xf32>
    %c1 = arith.constant 1 : index
    %27 = memref.load %arg9[%c1] : memref<3xf32, #tpu.memory_space<smem>>
    %28 = vector.broadcast %27 : f32 to vector<8x1xf32>
    %29 = arith.mulf %26, %28 : vector<8x1xf32>
    %c2 = arith.constant 2 : index
    %30 = memref.load %arg9[%c2] : memref<3xf32, #tpu.memory_space<smem>>
    %31 = vector.broadcast %30 : f32 to vector<8x1xf32>
    %32 = arith.addf %29, %31 : vector<8x1xf32>
    %c0_18 = arith.constant 0 : index
    %c0_19 = arith.constant 0 : index
    %33 = vector.load %arg10[%c0_18, %c0_19] : memref<8x1xf32, #tpu.memory_space<vmem>>, vector<8x1xf32>
    tpu.vector_store %arg10[%c0_18, %c0_19], %32 {strides = array<i32>} : memref<8x1xf32, #tpu.memory_space<vmem>>, vector<8x1xf32>,
    return
  }
  func.func @transform_0(%arg0: i32, %arg1: memref<8xi32, #tpu.memory_space<smem>>, %arg2: memref<8xi32, #tpu.memory_space<smem>>) -> (i32, i32) {
    %c0_i32 = arith.constant 0 : i32
    %c0_i32_0 = arith.constant 0 : i32
    %c0_i32_1 = arith.constant 0 : i32
    return %c0_i32, %c0_i32_0 : i32, i32
  }
  func.func @transform_1(%arg0: i32, %arg1: memref<8xi32, #tpu.memory_space<smem>>, %arg2: memref<8xi32, #tpu.memory_space<smem>>) -> (i32, i32) {
    %c0_i32 = arith.constant 0 : i32
    %c0_i32_0 = arith.constant 0 : i32
    %c0_i32_1 = arith.constant 0 : i32
    return %c0_i32, %c0_i32_0 : i32, i32
  }
  func.func @transform_2(%arg0: i32, %arg1: memref<8xi32, #tpu.memory_space<smem>>, %arg2: memref<8xi32, #tpu.memory_space<smem>>) -> (i32, i32) {
    %c0_i32 = arith.constant 0 : i32
    %c0_i32_0 = arith.constant 0 : i32
    %c0_i32_1 = arith.constant 0 : i32
    return %c0_i32, %c0_i32_0 : i32, i32
  }
  func.func @transform_3(%arg0: i32, %arg1: memref<8xi32, #tpu.memory_space<smem>>, %arg2: memref<8xi32, #tpu.memory_space<smem>>) -> (i32, i32) {
    %c0_i32 = arith.constant 0 : i32
    %c0_i32_0 = arith.constant 0 : i32
    %c0_i32_1 = arith.constant 0 : i32
    return %c0_i32, %c0_i32_0 : i32, i32
  }
  func.func @transform_4(%arg0: i32, %arg1: memref<8xi32, #tpu.memory_space<smem>>, %arg2: memref<8xi32, #tpu.memory_space<smem>>) -> (i32, i32) {
    %c0_i32 = arith.constant 0 : i32
    %c0_i32_0 = arith.constant 0 : i32
    %c0_i32_1 = arith.constant 0 : i32
    return %c0_i32, %c0_i32_0 : i32, i32
  }
  func.func @transform_5(%arg0: i32, %arg1: memref<8xi32, #tpu.memory_space<smem>>, %arg2: memref<8xi32, #tpu.memory_space<smem>>) -> (i32, i32) {
    %c0_i32 = arith.constant 0 : i32
    %c0_i32_0 = arith.constant 0 : i32
    %c0_i32_1 = arith.constant 0 : i32
    return %c0_i32, %c0_i32_0 : i32, i32
  }
  func.func @transform_6(%arg0: i32, %arg1: memref<8xi32, #tpu.memory_space<smem>>, %arg2: memref<8xi32, #tpu.memory_space<smem>>) -> i32 {
    %c0_i32 = arith.constant 0 : i32
    %c0_i32_0 = arith.constant 0 : i32
    return %c0_i32 : i32
  }
  func.func @transform_7(%arg0: i32, %arg1: memref<8xi32, #tpu.memory_space<smem>>, %arg2: memref<8xi32, #tpu.memory_space<smem>>) -> (i32, i32) {
    %c0_i32 = arith.constant 0 : i32
    %c0_i32_0 = arith.constant 0 : i32
    return %arg0, %c0_i32 : i32, i32
  }
}

</mosaic_0001>

<bundles_post_ra>
// kernel: tpu_custom_call.1
= control target key start
LH: loop header
LB: loop body
LE: loop exit
PB: predicated region body
PF: predicated region fallthrough
CT: control target
= control target key end

     0   :  { %s466_s0 = inlined_call_operand.vmem [shape: s32[8], index: 0, kind: input, shape index: {}]   ;;  %s467_s2 = inlined_call_operand.vmem [shape: f32[32,16], index: 2, kind: input, shape index: {}]   ;;  %s468_s3 = inlined_call_operand.vmem [shape: f32[48,16], index: 3, kind: input, shape index: {}]   ;;  %s469_s4 = inlined_call_operand.vmem [shape: f32[16,32], index: 4, kind: input, shape index: {}]   ;;  %s470_s5 = inlined_call_operand.vmem [shape: f32[16,32], index: 5, kind: input, shape index: {}]   ;;  %s471_s6 = inlined_call_operand.vmem [shape: f32[1,32], index: 6, kind: input, shape index: {}]   ;;  %s472_s7 = inlined_call_operand.vmem [shape: f32[1,32], index: 7, kind: input, shape index: {}]   ;;  %s473_s8 = inlined_call_operand.vmem [shape: f32[3], index: 8, kind: input, shape index: {}]   ;;  %s474_s9 = inlined_call_operand.vmem [shape: f32[8,1], index: 9, kind: output, shape index: {}]   ;;  %s475_s1 = inlined_call_operand.vmem [shape: s32[8], index: 1, kind: input, shape index: {}]  }
   0x1   :  { %s14_s11 = sshll.u32 %s466_s0, 4  ;;  %s18_s14 = sshll.u32 %s475_s1, 4  ;;  %s15_s11 = int_to_ptr.vmem [resolvable:$true] %s14_s11  ;;  %s19_s14 = int_to_ptr.vmem [resolvable:$true] %s18_s14 }
   0x2   :  { %s326_s15 = scalar_lea.vmem %s15_s11, 16  ;;  %p331_p1 = scmp.lt.s32.totalorder %s15_s11, %s15_s11 }
   0x3   :  { %p327_p0 = scmp.ne.s32.totalorder %s15_s11, %s326_s15  ;;  %p332_p2 = scmp.lt.s32.totalorder %s326_s15, %s326_s15 }
   0x5   :  { %p333_p3 = por %p332_p2, %p331_p1 }
   0x7   :  { %p334_p4 = pnand %p333_p3, %p327_p0 }
   0x9   :  { %337 = shalt.err (!%p334_p4)  }
   0xa   :  { %s374_s16 = smov [#allocation5]   ;;  %s338_s17 = scalar_lea.vmem %s19_s14, 16 }
   0xb   :  { %17 = dma.vmem_to_smem %s15_s11, 16, %s374_s16, [#allocation4] }
   0xc   :  { %p339_p5 = scmp.ne.s32.totalorder %s19_s14, %s338_s17  ;;  %p343_p6 = scmp.lt.s32.totalorder %s19_s14, %s19_s14 }
   0xd   :  { %p344_p7 = scmp.lt.s32.totalorder %s338_s17, %s338_s17 }
   0xf   :  { %p345_p8 = por %p344_p7, %p343_p6 }
  0x11   :  { %p346_p9 = pnand %p345_p8, %p339_p5 }
  0x13   :  { %349 = shalt.err (!%p346_p9)  }
  0x14   :  { %s375_s0 = smov [#allocation6]  }
  0x15   :  { %21 = dma.vmem_to_smem %s19_s14, 16, %s375_s0, [#allocation4] }
  0x16   :  { %366 = dma.done.wait [#allocation4], 32 }
  0x17   :  { %367 = vsyncadd [#allocation4], 4294967264 }
  0x18   :  { %23 = sfence }
  0x19   :  { %24 = vsyncpa [#allocation8], 0  ;;  %s43_s19 = sshll.u32 %s473_s8, 4  ;;  %s44_s19 = int_to_ptr.vmem [resolvable:$true] %s43_s19 }
  0x1a   :  { %s350_s20 = scalar_lea.vmem %s44_s19, 16  ;;  %p355_p11 = scmp.lt.s32.totalorder %s44_s19, %s44_s19 }
  0x1b   :  { %p351_p10 = scmp.ne.s32.totalorder %s44_s19, %s350_s20  ;;  %p356_p12 = scmp.lt.s32.totalorder %s350_s20, %s350_s20 }
  0x1d   :  { %p357_p13 = por %p356_p12, %p355_p11 }
  0x1f   :  { %p358_p0 = pnand %p357_p13, %p351_p10 }
  0x21   :  { %361 = shalt.err (!%p358_p0)
}
  0x22   :  { %s376_s21 = smov [#allocation7]  }
  0x23   :  { %46 = dma.vmem_to_smem %s44_s19, 16, %s376_s21, [#allocation8]  }
  0x24   :  { %368 = dma.done.wait [#allocation8], 16  }
  0x25   :  { %369 = vsyncadd [#allocation8], 4294967280 }
  0x26   :  { %50 = sfence }
  0x27   :  { %s370_s22 = smov 0  }
  0x28 LB: > { %s59_s23 = sld [smem:[#allocation5 + %s372_s22]]  ;;  %vm64_vm0 = vcmask 122880   ;;  %s63_s30 = scalar_lea.vmem [#allocation2], %s372_s22  ;;  %s372_s22 = sphi %s370_s22, %s57_s22  }
  0x29   : > { %s60_s24 = sld [smem:[#allocation6 + %s372_s22]]  ;;  %s68_s10 = scalar_lea.vmem [#allocation3], %s372_s22 }
  0x2a   : > { %s57_s22 = sadd.s32 1, %s372_s22  }
  0x2b   : > { %p54_p1 = scmp.ge.s32.totalorder %s57_s22, 8  }
  0x2c   :  { %v74_v2 = vld [vmem:[%s470_s5] sm:$0xff] (%p54_p1)  ;;  %v75_v3 = vld [vmem:[%s470_s5 + $0x8] sm:$0xff] (%p54_p1)  ;;  %v377_v5 = vmov (%p54_p1), 0.0|0.0   ;;  %vm378_vm1 = vmmov (%p54_p1), 0   ;;  %v379_v9 = vmov (%p54_p1), 0.0   ;;  %vm76_vm2 = vcmask (%p54_p1), 130048  }
  0x2d   :  { %56 = sbr.rel (!%p54_p1) target bundleno = 40 (0x28), region = 63  ;;  %v71_v4 = vld [vmem:[%s469_s4] sm:$0xff] (%p54_p1)  ;;  %302 = vmatprep.subr.bf16.mxu0 (%p54_p1), %v377_v5  ;;  %305 = vmatprep.subr.bf16.mxu1 (%p54_p1), %v377_v5  ;;  %v303_v6 = vpack.c.bf16 (%p54_p1), %v75_v3, %v74_v2  ;;  %v72_v7 = vld [vmem:[%s469_s4 + $0x8] sm:$0xff] (%p54_p1)  ;;  %vm240_vm3 = vcmask (%p54_p1), 261120   ;;  %s244_s1 = sld [smem:[#allocation7]] (%p54_p1)  ;;  %vm259_vm4 = vcmask (%p54_p1), 7168  }
  0x2e   : > { %s61_s26 = scalar_lea.vmem %s467_s2, %s59_s23  ;;  %v306_v8 = vpack.c.bf16 (%p54_p1), %v72_v7, %v71_v4  ;;  %292 = vmatprep.mubr.msk.f32.mxu0 (%p54_p1), %vm378_vm1, %v379_v9  ;;  %299 = vmatprep.mubr.msk.f32.mxu1 (%p54_p1), %vm378_vm1, %v379_v9  ;;  %v277_v14 = vld [vmem:[%s471_s6] ss:$0 sm:$0xff] (%p54_p1)  ;;  %s280_s6 = sld [smem:[#allocation7 + $0x1]] (%p54_p1) }
  0x2f   : > { %v62_v0 = vld [vmem:[%s61_s26] sm:$0x1]  ;;  %s66_s29 = scalar_lea.vmem %s468_s3, %s60_s24  ;;  %304 = vmatpush3.bf16.msra.mxu0 (%p54_p1), %v303_v6  ;;  %s281_s18 = sld [smem:[#allocation7 + $0x2]] (%p54_p1) }
  0x30   : > { %65 = vst.msk [vmem:[%s63_s30] sm:$0x1] %vm64_vm0, %v62_v0  ;;  %v67_v1 = vld [vmem:[%s66_s29] sm:$0x1]  ;;  %307 = vmatpush3.bf16.msra.mxu1 (%p54_p1), %v306_v8 }
  0x31   : > { %69 = vst.msk [vmem:[%s68_s10] sm:$0x1] %vm64_vm0, %v67_v1  ;;  %v278_v19 = vld [vmem:[%s472_s7] ss:$0 sm:$0xff] (%p54_p1) }
  0x33   :  { %v245_v23 = vstv (%p54_p1), %s244_s1 }
  0x34   :  { %v254_v29 = vstv %s280_s6 }
  0x35   :  { %v257_v31 = vstv %s281_s18 }
  0x37   :  { %v70_v11 = vld [vmem:[#allocation2] sm:$0xff] }
  0x38   :  { %v73_v10 = vld [vmem:[#allocation3] sm:$0xff]  ;;  %300 = vmatmul.mubr.msk.f32.vlgmr.msra.gmra.mrb[0].mxu1 %vm76_vm2, %v70_v11 }
  0x39   :  { %293 = vmatmul.mubr.msk.f32.vlgmr.msra.gmra.mrb[0].mxu0 %vm76_vm2, %v73_v10 }
 0x10b   :  { %v219_v13 = vpop.f32.mrb[0].mxu1 }
 0x10c   :  { %v146_v12 = vpop.f32.mrb[0].mxu0  ;;  %v301_v17 = vpop.f32.mrb[1].mxu1 }
 0x10d   :  { %v294_v15 = vpop.f32.mrb[1].mxu0  ;;  %v220_v16 = vadd.f32 %v219_v13, %v146_v12 }
 0x10f   :  { %v230_v18 = vadd.f32 %v277_v14, %v220_v16 }
 0x111   :  { %v231_v20 = vmax.f32 %v230_v18, 0.0 }
 0x113   :  { %v239_v21 = vmul.f32 %v278_v19, %v231_v20 }
 0x115   :  { %v241_v22 = vsel %vm240_vm3, %v239_v21, 0.0 }
 0x116   :  { %242 = vadd.xlane.f32.xlu0 %v241_v22 }
 0x1a3   :  { %v243_v24 = vpop.xlane.xlu0 %242 }
 0x1a4   :  { %v246_v25 = vadd.f32 %v245_v23, %v243_v24 }
 0x1a6   :  { %v279_v26 = vmul.f32 -1.442695, %v246_v25 }
 0x1a8   :  { %322 = vpow2.f32 %v279_v26 }
 0x1b2   :  { %v323_v27 = vpop.eup %322 }
 0x1b3   :  { %v250_v28 = vadd.f32 1.0, %v323_v27 }
 0x1b5   :  { %324 = vrcp.f32 %v250_v28 }
 0x1bf   :  { %v325_v30 = vpop.eup %324 }
 0x1c0   :  { %v255_v32 = vmul.f32 %v325_v30, %v254_v29 }
 0x1c2   :  { %v258_v33 = vadd.f32 %v257_v31, %v255_v32 }
 0x1c4   :  { %260 = vst.msk [vmem:[%s474_s9] sm:$0xff] %vm259_vm4, %v258_v33 }
 0x1c5   :  { %265 = vsyncpa [#allocation8], 1 }

</bundles_post_ra>
